<compile_context>
chip_gen: v6e
topology: v6e:2x2x1
jax: 0.10.0
libtpu: 0.0.40
codegen_flags: <defaults>
</compile_context>

<pallas_src>
import jax
import jax.numpy as jnp
from jax import lax
from jax.experimental import pallas as pl
from jax.experimental.pallas import tpu as pltpu


def _round_up(x, m):
    return ((x + m - 1) // m) * m


def _noncrossing_mask(d):
    """M[k, j] = 1 if k == 0 or 1 <= k <= j, so (g @ M)[:, j] = g0 + cumsum(g1..gj)."""
    row = jnp.arange(d)[:, None]
    col = jnp.arange(d)[None, :]
    m = (row == 0) | ((row >= 1) & (row <= col))
    return m.astype(jnp.float32)


# ---------------------------------------------------------------------------
# Fused kernel: x -> [Linear (+ReLU)] * L -> optional non-crossing epilogue
# ---------------------------------------------------------------------------
def _make_fused_kernel(n_layers, noncrossing):
    def kernel(*refs):
        x_ref = refs[0]
        o_ref = refs[-1]
        if noncrossing:
            wb_refs = refs[1:-2]              # (w0, b0, w1, b1, ...)
            m_ref = refs[-2]                  # (D, D) cumulative-sum mask
        else:
            wb_refs = refs[1:-1]
            m_ref = None

        h = x_ref[...]                        # (TB, Din) f32
        for li in range(n_layers):            # unrolled at trace time
            w = wb_refs[2 * li][...]          # (Din_l, Dout_l) bf16
            b = wb_refs[2 * li + 1][...]      # (1, Dout_l) f32 -> broadcasts
            # bf16 MXU inputs, f32 accumulation.
            h = jnp.dot(h.astype(jnp.bfloat16), w,
                        preferred_element_type=jnp.float32) + b
            if li < n_layers - 1:
                h = jnp.maximum(h, 0.0)       # ReLU on all but last layer

        if noncrossing:
            # out[:, 0]    = h[:, 0]
            # out[:, j>=1] = h[:, 0] + sum_{k=1..j} softplus(h[:, k])
            # One matmul against the host-precomputed mask: select column 0
            # raw vs. softplus, then g @ M builds the whole (TB, D) tile.
            d = h.shape[-1]
            col = lax.broadcasted_iota(jnp.int32, (1, d), 1)
            # Numerically stable softplus: max(h,0) + log(1 + exp(-|h|)).
            sp = jnp.maximum(h, 0.0) + jnp.log(1.0 + jnp.exp(-jnp.abs(h)))
            g = jnp.where(col == 0, h, sp)
            # Keep the epilogue matmul in f32 (mask is exact 0/1).
            h = jnp.dot(g, m_ref[...], preferred_element_type=jnp.float32)

        o_ref[...] = h.astype(o_ref.dtype)    # full-width, lane-dense store

    return kernel


# ---------------------------------------------------------------------------
# Wrapper: one pallas_call for the whole network, batch-tiled grid.
# ---------------------------------------------------------------------------
def dqr_forward_pallas(x, params, noncrossing=False, block_batch=1024,
                       min_grid_steps=2, vmem_limit_bytes=None):
    B, Din = x.shape
    n_layers = len(params)
    Dout = params[-1][0].shape[1]
    Dout_pad = _round_up(Dout, 128)           # lane-dense output store

    # Batch tile: multiple of 8 sublanes, capped by block_batch / batch size.
    TB = min(_round_up(block_batch, 8), _round_up(B, 8))
    # Guarantee >= min_grid_steps grid steps so v7x's 2 TensorCores both work.
    if min_grid_steps > 1 and pl.cdiv(B, TB) < min_grid_steps and B > 8:
        TB = max(8, _round_up(pl.cdiv(B, min_grid_steps), 8))
    grid = (pl.cdiv(B, TB),)                  # tail tile handled by Pallas

    in_specs = [pl.BlockSpec((TB, Din), lambda i: (i, 0))]
    flat_args = [x]
    for li, (w, b) in enumerate(params):
        if li == n_layers - 1 and Dout_pad != Dout:
            w = jnp.pad(w, ((0, 0), (0, Dout_pad - Dout)))
            b = jnp.pad(b, (0, Dout_pad - Dout))
        din_l, dout_l = w.shape
        in_specs.append(pl.BlockSpec((din_l, dout_l), lambda i: (0, 0)))
        in_specs.append(pl.BlockSpec((1, dout_l), lambda i: (0, 0)))
        flat_args.append(w.astype(jnp.bfloat16))         # bf16 weights, once
        flat_args.append(b.astype(jnp.float32).reshape(1, dout_l))

    if noncrossing:
        mask = _noncrossing_mask(Dout_pad)
        in_specs.append(pl.BlockSpec((Dout_pad, Dout_pad), lambda i: (0, 0)))
        flat_args.append(mask)

    # Note (v5e): if TB is pushed past ~2048 at Din/Dout=256 f32, pass
    # vmem_limit_bytes explicitly to bump the 16 MiB default scoped limit.
    out = pl.pallas_call(
        _make_fused_kernel(n_layers, noncrossing),
        out_shape=jax.ShapeDtypeStruct((B, Dout_pad), jnp.float32),
        grid_spec=pltpu.PrefetchScalarGridSpec(
            num_scalar_prefetch=0,
            grid=grid,
            in_specs=in_specs,
            out_specs=pl.BlockSpec((TB, Dout_pad), lambda i: (i, 0)),
        ),
        compiler_params=pltpu.CompilerParams(
            dimension_semantics=("parallel",),
            vmem_limit_bytes=vmem_limit_bytes),
    )(*flat_args)

    return out[:, :Dout] if Dout_pad != Dout else out


# ---------------------------------------------------------------------------
# Pure-JAX references (match the PyTorch module's forward)
# ---------------------------------------------------------------------------
def dqr_forward_ref(x, params, noncrossing=False, bf16_matmul=False):
    h = x
    n_layers = len(params)
    for li, (w, b) in enumerate(params):
        if bf16_matmul:
            h = jnp.dot(h.astype(jnp.bfloat16), w.astype(jnp.bfloat16),
                        preferred_element_type=jnp.float32) + b
        else:
            h = h @ w + b
        if li < n_layers - 1:
            h = jnp.maximum(h, 0.0)
    if not noncrossing:
        return h
    h0 = h[:, 0:1]
    gaps = h[:, 1:]
    sp = jnp.maximum(gaps, 0.0) + jnp.log(1.0 + jnp.exp(-jnp.abs(gaps)))
    cs = jnp.cumsum(sp, axis=1)
    return jnp.concatenate([h0, h0 + cs], axis=1)


def init_params(key, width_vec):
    """Deterministic init; shapes follow nn.Linear(width_vec[i], width_vec[i+1])."""
    params = []
    for i in range(len(width_vec) - 1):
        key, kw, kb = jax.random.split(key, 3)
        fan_in = width_vec[i]
        bound = 1.0 / jnp.sqrt(fan_in)
        w = jax.random.uniform(kw, (width_vec[i], width_vec[i + 1]),
                               jnp.float32, -bound, bound)
        b = jax.random.uniform(kb, (width_vec[i + 1],),
                               jnp.float32, -bound, bound)
        params.append((w, b))
    return params


if __name__ == "__main__":
    # Small shapes consistent with the module (analogue of width_vec=[256,256,256]).
    width_vec = [32, 64, 32]
    batch = 50          # not a multiple of the tile -> exercises the tail tile
    block_batch = 16    # small tile so the grid has >1 step

    key = jax.random.PRNGKey(0)
    key, kx = jax.random.split(key)
    x = jax.random.normal(kx, (batch, width_vec[0]), jnp.float32)
    params = init_params(key, width_vec)

    for nc in (False, True):
        out = dqr_forward_pallas(x, params, noncrossing=nc,
                                 block_batch=block_batch)
        out = jax.block_until_ready(out)
        # Tight check against a reference that mimics the kernel's bf16 matmuls.
        ref_bf16 = dqr_forward_ref(x, params, noncrossing=nc, bf16_matmul=True)
        assert out.shape == ref_bf16.shape, f"shape mismatch (noncrossing={nc})"
        assert jnp.allclose(out, ref_bf16, atol=1e-2, rtol=1e-2), \
            f"bf16-reference mismatch (noncrossing={nc})"
        # Loose sanity check against the full-f32 reference.
        ref_f32 = dqr_forward_ref(x, params, noncrossing=nc, bf16_matmul=False)
        assert jnp.allclose(out, ref_f32, atol=1e-1, rtol=1e-1), \
            f"f32-reference mismatch (noncrossing={nc})"

    print("KERNEL_OK")
</pallas_src>

<mosaic_0001>
module attributes {stable_mosaic.version = 11 : i64} {
  func.func @kernel(%arg0: i32, %arg1: memref<16x32xf32, #tpu.memory_space<vmem>>, %arg2: memref<32x64xbf16, #tpu.memory_space<vmem>>, %arg3: memref<1x64xf32, #tpu.memory_space<vmem>>, %arg4: memref<64x128xbf16, #tpu.memory_space<vmem>>, %arg5: memref<1x128xf32, #tpu.memory_space<vmem>>, %arg6: memref<16x128xf32, #tpu.memory_space<vmem>>) attributes {dimension_semantics = [#tpu.dimension_semantics<parallel>], iteration_bounds = array<i64: 4>, scalar_prefetch = 0 : i64, scratch_operands = 0 : i64, tpu.core_type = #tpu.core_type<tc>, window_params = [{transform_indices = @transform_0, window_bounds = array<i64: 16, 32>}, {pipeline_mode = #tpu.pipeline_mode<synchronous>, transform_indices = @transform_1, window_bounds = array<i64: 32, 64>}, {pipeline_mode = #tpu.pipeline_mode<synchronous>, transform_indices = @transform_2, window_bounds = array<i64: 1, 64>}, {pipeline_mode = #tpu.pipeline_mode<synchronous>, transform_indices = @transform_3, window_bounds = array<i64: 64, 128>}, {pipeline_mode = #tpu.pipeline_mode<synchronous>, transform_indices = @transform_4, window_bounds = array<i64: 1, 128>}, {transform_indices = @transform_5, window_bounds = array<i64: 16, 128>}]} {
    %c0 = arith.constant 0 : index
    %c0_0 = arith.constant 0 : index
    %0 = vector.load %arg1[%c0, %c0_0] : memref<16x32xf32, #tpu.memory_space<vmem>>, vector<16x32xf32>
    %c0_1 = arith.constant 0 : index
    %c0_2 = arith.constant 0 : index
    %1 = vector.load %arg2[%c0_1, %c0_2] : memref<32x64xbf16, #tpu.memory_space<vmem>>, vector<32x64xbf16>
    %c0_3 = arith.constant 0 : index
    %c0_4 = arith.constant 0 : index
    %2 = vector.load %arg3[%c0_3, %c0_4] : memref<1x64xf32, #tpu.memory_space<vmem>>, vector<1x64xf32>
    %3 = arith.truncf %0 : vector<16x32xf32> to vector<16x32xbf16>
    %cst = arith.constant dense<0.000000e+00> : vector<16x64xf32>
    %4 = tpu.matmul %3, %1, %cst {dimension_numbers = #tpu.dot_dimension_numbers<[1], [0], [0], [1], [0, 0, 1, 1], [], []>} : vector<16x32xbf16>, vector<32x64xbf16>, vector<16x64xf32> -> vector<16x64xf32>
    %5 = vector.broadcast %2 : vector<1x64xf32> to vector<16x64xf32>
    %6 = arith.addf %4, %5 : vector<16x64xf32>
    %cst_5 = arith.constant 0.000000e+00 : f32
    %7 = vector.broadcast %cst_5 : f32 to vector<16x64xf32>
    %8 = arith.maximumf %6, %7 : vector<16x64xf32>
    %c0_6 = arith.constant 0 : index
    %c0_7 = arith.constant 0 : index
    %9 = vector.load %arg4[%c0_6, %c0_7] : memref<64x128xbf16, #tpu.memory_space<vmem>>, vector<64x128xbf16>
    %c0_8 = arith.constant 0 : index
    %c0_9 = arith.constant 0 : index
    %10 = vector.load %arg5[%c0_8, %c0_9] : memref<1x128xf32, #tpu.memory_space<vmem>>, vector<1x128xf32>
    %11 = arith.truncf %8 : vector<16x64xf32> to vector<16x64xbf16>
    %cst_10 = arith.constant dense<0.000000e+00> : vector<16x128xf32>
    %12 = tpu.matmul %11, %9, %cst_10 {dimension_numbers = #tpu.dot_dimension_numbers<[1], [0], [0], [1], [0, 0, 1, 1], [], []>} : vector<16x64xbf16>, vector<64x128xbf16>, vector<16x128xf32> -> vector<16x128xf32>
    %13 = vector.broadcast %10 : vector<1x128xf32> to vector<16x128xf32>
    %14 = arith.addf %12, %13 : vector<16x128xf32>
    %c0_11 = arith.constant 0 : index
    %c0_12 = arith.constant 0 : index
    %15 = vector.load %arg6[%c0_11, %c0_12] : memref<16x128xf32, #tpu.memory_space<vmem>>, vector<16x128xf32>
    tpu.vector_store %arg6[%c0_11, %c0_12], %14 {strides = array<i32>} : memref<16x128xf32, #tpu.memory_space<vmem>>, vector<16x128xf32>,
    return
  }
  func.func @transform_0(%arg0: i32) -> (i32, i32) {
    %c0_i32 = arith.constant 0 : i32
    %c0_i32_0 = arith.constant 0 : i32
    return %arg0, %c0_i32 : i32, i32
  }
  func.func @transform_1(%arg0: i32) -> (i32, i32) {
    %c0_i32 = arith.constant 0 : i32
    %c0_i32_0 = arith.constant 0 : i32
    %c0_i32_1 = arith.constant 0 : i32
    return %c0_i32, %c0_i32_0 : i32, i32
  }
  func.func @transform_2(%arg0: i32) -> (i32, i32) {
    %c0_i32 = arith.constant 0 : i32
    %c0_i32_0 = arith.constant 0 : i32
    %c0_i32_1 = arith.constant 0 : i32
    return %c0_i32, %c0_i32_0 : i32, i32
  }
  func.func @transform_3(%arg0: i32) -> (i32, i32) {
    %c0_i32 = arith.constant 0 : i32
    %c0_i32_0 = arith.constant 0 : i32
    %c0_i32_1 = arith.constant 0 : i32
    return %c0_i32, %c0_i32_0 : i32, i32
  }
  func.func @transform_4(%arg0: i32) -> (i32, i32) {
    %c0_i32 = arith.constant 0 : i32
    %c0_i32_0 = arith.constant 0 : i32
    %c0_i32_1 = arith.constant 0 : i32
    return %c0_i32, %c0_i32_0 : i32, i32
  }
  func.func @transform_5(%arg0: i32) -> (i32, i32) {
    %c0_i32 = arith.constant 0 : i32
    %c0_i32_0 = arith.constant 0 : i32
    return %arg0, %c0_i32 : i32, i32
  }
}

</mosaic_0001>

<bundles_post_ra>
// kernel: tpu_custom_call.1
= control target key start
LH: loop header
LB: loop body
LE: loop exit
PB: predicated region body
PF: predicated region fallthrough
CT: control target
= control target key end

     0   :  { %10 = vsyncpa [#allocation3], 0  ;;  %s833_s0 = inlined_call_operand.vmem [shape: f32[50,32], index: 0, kind: input, shape index: {}]   ;;  %s834_s1 = inlined_call_operand.vmem [shape: bf16[32,64], index: 1, kind: input, shape index: {}]   ;;  %s835_s2 = inlined_call_operand.vmem [shape: f32[1,64], index: 2, kind: input, shape index: {}]   ;;  %s836_s3 = inlined_call_operand.vmem [shape: bf16[64,128], index: 3, kind: input, shape index: {}]   ;;  %s837_s4 = inlined_call_operand.vmem [shape: f32[1,128], index: 4, kind: input, shape index: {}]   ;;  %s838_s5 = inlined_call_operand.hbm [shape: f32[50,128], index: 5, kind: output, shape index: {}]  }
   0x1   :  { %12 = vsyncpa [#allocation3 + $0x1], 0  ;;  %s693_s18 = smov 0   ;;  %s695_s19 = smov 0  }
   0x2   :  { %s697_s20 = smov 0   ;;  %s699_s21 = smov 0  }
   0x3 LB: > { %s714_s22 = sadd.s32 4294967295, %s656_s21   ;;  %s493_s23 = sadd.s32 4294967294, %s656_s21   ;;  %s656_s21 = sphi %s699_s21, %s844_s21   ;;  %s652_s20 = sphi %s697_s20, %s843_s20   ;;  %s648_s19 = sphi %s695_s19, %s842_s19   ;;  %s644_s18 = sphi %s693_s18, %s841_s18  }
   0x4   : > { %s718_s24 = sadd.s32 1, %s656_s21   ;;  %s135_s25 = sadd.s32 1, %s652_s20 }
   0x5   : > { %s132_s26 = ssub.s32 %s656_s21, %s718_s24  ;;  %p145_p0 = scmp.ne.s32.totalorder %s652_s20, %s648_s19 }
   0x6   : > { %p133_p1 = scmp.eq.s32.totalorder %s132_s26, 0  ;;  %p146_p2 = scmp.eq.s32.totalorder %s714_s22, 3 }
   0x7   : > { %p151_p3 = scmp.ne.s32.totalorder %s648_s19, %s644_s18  ;;  %p152_p4 = scmp.eq.s32.totalorder %s493_s23, 3 }
   0x8   : > { %s729_s27 = scalar_select %p133_p1, %s652_s20, %s135_s25  }
   0x9   : > { %p731_p5 = por %p146_p2, %p145_p0  ;;  %p735_p6 = por %p152_p4, %p151_p3 }
   0xa   : > { %p496_p7 = scmp.ge.s32.totalorder %s656_s21, 1  ;;  %p199_p8 = scmp.lt.s32.totalorder %s656_s21, 5 }
   0xc   : > { %p200_p9 = pnand %p496_p7, %p199_p8 }
   0xd   : > { %s748_s9 = sshll.u32 (!%p200_p9), %s714_s22, 1  ;;  %s228_s10 = sand.u32 (!%p200_p9), 1, %s648_s19  }
   0xe   : > { %203 = sbr.rel (%p200_p9) target bundleno = 458 (0x1ca), region = 40  ;;  %p236_p10 = scmp.lt.s32.totalorder (!%p200_p9), %s748_s9, 6 }
   0xf   : > { %s497_s11 = sshll.u32 (!%p200_p9), %s228_s10, 4  ;;  %s774_s15 = scalar_lea.sflag (!%p200_p9), [#allocation3], %s228_s10 }
  0x10   : > { %s230_s14 = scalar_lea.vmem (!%p200_p9), [#allocation2], %s497_s11 }
  0x13   : > { %v590_v0 = vld [vmem:[%s834_s1 + $0x8] sm:$0xff]   ;;  %v658_v1 = vmov 0.0   ;;  %v591_v2 = vld [vmem:[%s834_s1] sm:$0xff]   ;;  %vm659_vm0 = vmmov 0   ;;  %v592_v3 = vld [vmem:[%s836_s3 + $0x18] sm:$0xff]   ;;  %s237_s12 = scalar_select %p236_p10, %s748_s9, 6 }
  0x14   : > { %528 = vmatprep.subr.bf16.mxu0 %v658_v1  ;;  %536 = vmatprep.subr.bf16.mxu1 %v658_v1  ;;  %vm277_vm1 = vcmask 261120   ;;  %v593_v7 = vld [vmem:[%s836_s3 + $0x10] sm:$0xff]   ;;  %v594_v8 = vld [vmem:[%s836_s3 + $0x8] sm:$0xff]   ;;  %v595_v9 = vld [vmem:[%s836_s3] sm:$0xff]   ;;  %vm364_vm2 = vcmask 523264  }
  0x15   : > { %529 = vmatpush3.bf16.msra.mxu0 %v590_v0  ;;  %532 = vmatprep.mubr.msk.bf16.mxu0 %vm659_vm0, %v658_v1  ;;  %s499_s13 = sshll.u32 %s237_s12, 3  ;;  %v500_v10 = vld [vmem:[%s835_s2] ss:$0 sm:$0xff] }
  0x16   : > { %530 = vmatprep.subr.bf16.mxu0 %v658_v1  ;;  %544 = vmatprep.mubr.msk.bf16.mxu1 %vm659_vm0, %v658_v1  ;;  %s239_s16 = scalar_lea.vmem %s833_s0, %s499_s13  ;;  %v504_v20 = vld [vmem:[%s837_s4] ss:$0 sm:$0xff] }
  0x17   : > { %537 = vmatpush3.bf16.msra.mxu1 %v592_v3  ;;  %v251_v4 = vld [vmem:[%s239_s16] sm:$0xff]  ;;  %v252_v5 = vld [vmem:[%s239_s16 + $0x8] sm:$0xff]  ;;  %s420_s16 = ssub.s32 (%p731_p5), 7, %s748_s9 }
  0x18   : > { %538 = vmatprep.subr.bf16.mxu1 %v658_v1  ;;  %v258_v6 = vpack.c.bf16 %v252_v5, %v251_v4  ;;  %p421_p11 = scmp.lt.s32.totalorder (%p731_p5), %s420_s16, 2 }
  0x19   : > { %531 = vmatpush3.bf16.msra.mxu0 %v591_v2 }
  0x1b   : > { %539 = vmatpush3.bf16.msra.mxu1 %v593_v7 }
  0x1c   : > { %533 = vmatmul.mubr.msk.bf16.vlgmr.msra.gmra.mxu0 %vm277_vm1, %v258_v6  ;;  %540 = vmatprep.subr.bf16.mxu1 %v658_v1 }
  0x1f   : > { %541 = vmatpush3.bf16.msra.mxu1 %v594_v8 }
  0x20   : > { %542 = vmatprep.subr.bf16.mxu1 %v658_v1 }
  0x23   : > { %543 = vmatpush3.bf16.msra.mxu1 %v595_v9 }
  0xdc   : > { %v315_v11 = vpop.f32.mrf.mxu0 }
  0xdd   : > { %v316_v13 = vadd.f32 %v500_v10, %v315_v11 }
  0xde   : > { %v534_v12 = vpop.f32.mrf.mxu0 }
  0xdf   : > { %v322_v17 = vmax.f32 %v316_v13, 0.0 }
  0xe0   : > { %v318_v14 = vpop.f32.mrf.mxu0 }
  0xe1   : > { %v319_v15 = vadd.f32 %v500_v10, %v318_v14 }
  0xe2   : > { %v535_v16 = vpop.f32.mrf.mxu0 }
  0xe3   : > { %v323_v18 = vmax.f32 %v319_v15, 0.0 }
  0xe5   : > { %v333_v19 = vpack.c.bf16 %v323_v18, %v322_v17 }
  0xe7   : > { %545 = vmatmul.mubr.msk.bf16.vlgmr.msra.gmra.mxu1 %vm364_vm2, %v333_v19 }
 0x1a7   : > { %v402_v21 = vpop.f32.mrf.mxu1 }
 0x1a8   : > { %v403_v22 = vadd.f32 %v504_v20, %v402_v21 }
 0x1a9   : > { %v546_v23 = vpop.f32.mrf.mxu1 }
 0x1aa   : > { %409 = vst [vmem:[%s230_s14] sm:$0xff] %v403_v22  ;;  %418 = sbr.rel (!%p731_p5) target bundleno = 458 (0x1ca), region = 44 }
 0x1ab   : > { %v405_v24 = vpop.f32.mrf.mxu1 }
 0x1ac   : > { %v406_v25 = vadd.f32 %v504_v20, %v405_v24 }
 0x1ad   : > { %v547_v26 = vpop.f32.mrf.mxu1 }
 0x1ae   : > { %410 = vst [vmem:[%s230_s14 + $0x8] sm:$0xff] %v406_v25 }
 0x1af   : > { %s846_s16 = smov (!%p421_p11, %s420_s16), 2 }
 0x1b0   : > { %s779_s17 = sshll.u32 %s846_s16, 7 }
 0x1b1   : > { %s425_s23 = ssub.s32 256, %s779_s17 }
 0x1b2   : > { %426 = vsyncadd %s774_s15, %s425_s23  ;;  %p513_p12 = scmp.ne.s32.totalorder %s779_s17, 0  ;;  %s519_s25 = sshll.u32 %s714_s22, 8 }
 0x1b3   : > { %s788_s28 = scalar_lea.hbm %s838_s5, %s519_s25  ;;  %s431_s6 = sshll.u32 %s230_s14, 4  ;;  %s790_s6 = int_to_ptr.vmem [resolvable:$true] %s431_s6 }
 0x1b4   : > { %s596_s9 = scalar_lea.vmem %s790_s6, %s779_s17  ;;  %s660_s7 = smov [#allocation2]  }
 0x1b5   : > { %p597_p13 = scmp.ne.s32.totalorder %s790_s6, %s596_s9  ;;  %s600_s8 = sshll.u32 %s660_s7, 4  ;;  %s601_s8 = int_to_ptr.vmem [resolvable:$false] %s600_s8 }
 0x1b6   : > { %s602_s22 = scalar_lea.vmem %s601_s8, 512  ;;  %p603_p2 = scmp.lt.s32.totalorder %s790_s6, %s601_s8 }
 0x1b7   : > { %p598_p0 = pnand %p597_p13, %p513_p12  ;;  %p604_p3 = scmp.lt.s32.totalorder %s602_s22, %s596_s9 }
 0x1b9   : > { %p599_p1 = pneg %p598_p0  ;;  %p605_p4 = por %p604_p3, %p603_p2 }
 0x1bb   : > { %p606_p5 = pnand %p605_p4, %p599_p1 }
 0x1bd   : > { %609 = shalt.err (!%p606_p5)
}
 0x1be   : > { %s610_s10 = scalar_lea.hbm %s788_s28, %s779_s17  ;;  %s614_s13 = scalar_lea.hbm %s838_s5, 896 }
 0x1bf   : > { %p611_p7 = scmp.ne.s32.totalorder %s788_s28, %s610_s10  ;;  %p615_p10 = scmp.lt.s32.totalorder %s788_s28, %s838_s5 }
 0x1c0   : > { %p616_p11 = scmp.lt.s32.totalorder %s614_s13, %s610_s10 }
 0x1c1   : > { %p612_p8 = pnand %p611_p7, %p513_p12 }
 0x1c2   : > { %p617_p13 = por %p616_p11, %p615_p10 }
 0x1c3   : > { %p613_p9 = pneg %p612_p8 }
 0x1c5   : > { %p618_p0 = pnand %p617_p13, %p613_p9 }
 0x1c7   : > { %621 = shalt.err (!%p618_p0)
}
 0x1c8   : > { %s661_s23 = smov 128   ;;  %s662_s25 = smov 8  }
 0x1c9   : > { %437 = dma.vmem_to_hbm [thread:$0]  (%p513_p12), %s790_s6, %s779_s17, %s788_s28, %s774_s15, %s661_s23, %s661_s23, %s662_s25  }
 0x1ca PF: > { %p553_p1 = scmp.ge.s32.totalorder %s656_s21, 2  ;;  %s446_s26 = sand.u32 1, %s644_s18  }
 0x1cb   : > { %s447_s30 = scalar_lea.sflag [#allocation3], %s446_s26 }
 0x1cc   : > { %p550_p2 = pnand %p553_p1, %p735_p6 }
 0x1ce   : > { %p551_p3 = pneg %p550_p2 }
 0x1d0   : > { %639 = dma.done.wait (%p551_p3), %s447_s30, 256  }
 0x1d1   : > { %641 = vsyncadd (%p551_p3), %s447_s30, 4294967040  ;;  %p15_p4 = scmp.ge.s32.totalorder %s718_s24, 6   ;;  %s841_s18 = smov %s648_s19 }
 0x1d2   : > { %s842_s19 = smov %s652_s20  ;;  %s843_s20 = smov %s729_s27 }
 0x1d3   : > { %s844_s21 = smov %s718_s24  ;;  %17 = sbr.rel (!%p15_p4) target bundleno = 3 (0x3), region = 75 }
 0x1d8   :  { %452 = vsyncpa [#allocation3], 1 }
 0x1d9   :  { %454 = vsyncpa [#allocation3 + $0x1], 1 }

</bundles_post_ra>
